<compile_context>
chip_gen: v7x
topology: tpu7x:2x2x1
jax: 0.10.0
libtpu: 0.0.40
codegen_flags: <defaults>
</compile_context>

<pallas_src>
import functools

import jax
import jax.numpy as jnp
from jax import lax
from jax.experimental import pallas as pl
from jax.experimental.pallas import tpu as pltpu


def _round_up(x, m):
    return (x + m - 1) // m * m


def _vmem_capacity_bytes():
    """Per-core VMEM capacity; conservative fallback if the query is unavailable."""
    try:
        return int(pltpu.get_tpu_info().vmem_capacity_bytes)
    except Exception:
        return 64 << 20  # v7x per-TensorCore VMEM (smallest of the targets)


def _choose_n_tile(N, B):
    """Lane tile for output points: large (amortize ~0.35us/step), exact-dividing
    when possible, and with B*num_n >= 2 so both v7x TensorCores get work."""
    for tn in (512, 256, 128):
        if N % tn == 0 and B * (N // tn) >= 2:
            return tn
    for tn in (512, 256, 128):
        if N % tn == 0:
            return tn
    if B == 1 and N > 256:
        return 256
    return min(512, _round_up(N, 128))


def _choose_h_slab(Hf, P, C, tn, itemsize, budget_bytes):
    """Largest depth-slab hs whose footprint (double-buffered feature slab +
    materialized weight tile) fits the budget.  Prefers exact divisors of Hf
    (no depth padding); otherwise pads the depth (zero rows -> exact zeros)."""
    row_bytes = P * (2 * C * itemsize + tn * (itemsize + 4))
    hs_max = int(max(1, min(Hf, budget_bytes // max(1, row_bytes))))
    if hs_max >= Hf:
        return Hf, 1, Hf
    hs_div = max((h for h in range(1, hs_max + 1) if Hf % h == 0), default=1)
    if 2 * hs_div >= hs_max:
        return hs_div, Hf // hs_div, Hf
    num_s = -(-Hf // hs_max)
    return hs_max, num_s, num_s * hs_max


def _grid_sample_identity_kernel(coords_ref, feat_ref, out_ref, *scratch,
                                 Hf, Wf, T, P, hs, num_s, compute_dtype):
    multi = num_s > 1
    tn = out_ref.shape[-1]
    if multi:
        acc_ref, oyx_ref = scratch
        s_step = pl.program_id(2)

    # --- per-point coordinate math on the whole (3, tn) tile at once ---
    c = coords_ref[...].astype(jnp.float32)                      # (3, tn)
    row = lax.broadcasted_iota(jnp.int32, (3, tn), 0)
    scale = jnp.where(row == 0, 0.5 * (T - 1),
                      jnp.where(row == 1, 0.5 * (Wf - 1), 0.5 * (Hf - 1)))
    f = (c + 1.0) * scale        # align_corners=True: [-1,1] -> [0, dim-1]
    f0 = jnp.floor(f)
    w1 = f - f0
    i0 = f0.astype(jnp.int32)
    ix0, iy0, iz0 = i0[0:1, :], i0[1:2, :], i0[2:3, :]           # x->T, y->W, z->H
    wx1, wy1, wz1 = w1[0:1, :], w1[1:2, :], w1[2:3, :]

    def build_oyx():
        # (P, tn) weighted one-hot over the in-plane (w, t) pair.  OOB corner
        # indices (e.g. ix0+1 == T) never match the valid iota range, so
        # padding_mode='zeros' falls out for free; padded rows (p >= Wf*T) only
        # ever hit zero-valued feature rows.
        p = lax.broadcasted_iota(jnp.int32, (P, tn), 0)
        if (T & (T - 1)) == 0:                 # division-free split (common case)
            t_idx = p & (T - 1)
            w_idx = p >> (T.bit_length() - 1)
        else:                                  # rare non-power-of-two fallback
            t_idx = p % T
            w_idx = p // T
        return ((jnp.where(w_idx == iy0, 1.0 - wy1, 0.0)
                 + jnp.where(w_idx == iy0 + 1, wy1, 0.0))
                * (jnp.where(t_idx == ix0, 1.0 - wx1, 0.0)
                   + jnp.where(t_idx == ix0 + 1, wx1, 0.0)))

    if multi:
        # The in-plane one-hot is s-invariant: build it once per (b, n) and cache.
        @pl.when(s_step == 0)
        def _():
            acc_ref[...] = jnp.zeros_like(acc_ref)
            oyx_ref[...] = build_oyx()
        oyx = oyx_ref[...]
        h_base = s_step * hs
    else:
        oyx = build_oyx()
        h_base = 0

    # (hs, tn) weighted one-hot over this step's depth (H) slab (global indices).
    h_iota = lax.broadcasted_iota(jnp.int32, (hs, tn), 0) + h_base
    oz = (jnp.where(h_iota == iz0, 1.0 - wz1, 0.0)
          + jnp.where(h_iota == iz0 + 1, wz1, 0.0))

    # Separable outer product -> (ts, tn) weight tile (ONE full-size f32 multiply),
    # then a single cast to the MXU compute dtype (bf16 default, f32 accumulate).
    wmat = (oz[:, None, :] * oyx[None, :, :]).reshape(hs * P, tn)
    wmat = wmat.astype(compute_dtype)

    # Transposed product: (C, tn) = feat(ts, C)^T @ wmat(ts, tn) -> lane-dense store.
    partial = lax.dot_general(
        feat_ref[...], wmat,
        dimension_numbers=(((0,), (0,)), ((), ())),
        preferred_element_type=jnp.float32)

    if multi:
        acc_ref[...] += partial

        @pl.when(s_step == pl.num_programs(2) - 1)
        def _():
            out_ref[...] = acc_ref[...].astype(out_ref.dtype)
    else:
        out_ref[...] = partial.astype(out_ref.dtype)


def random_scale_up_sampler(feature, coords, *, compute_dtype=jnp.bfloat16,
                            slab_budget_bytes=None):
    """Pallas equivalent of RandomScaleUpSampler(decoder='identity',
    interp_mode='bilinear', has_event_feature=False).forward.

    feature: (B, H, W, T, C) float32
    coords : (B, 1, Ho, Wo, 3) float32, normalized grid in [-1, 1]
    returns: (B, C, Ho, Wo), same dtype as `feature`

    compute_dtype: MXU input dtype for the feature / interp-weight matmul.
      bf16 (default) keeps f32 accumulation (abs error ~1e-2 for unit-scale
      features); pass jnp.float32 for exact trilinear interpolation.
    slab_budget_bytes: optional override of the depth-slab VMEM budget (tuning).
    """
    B, Hf, Wf, T, C = feature.shape
    Bc, Do, Ho, Wo, three = coords.shape
    assert Bc == B and three == 3
    assert Do == 1, "torch code's squeeze(3) requires coords.shape[1] == 1"

    compute_dtype = jnp.dtype(compute_dtype)
    itemsize = compute_dtype.itemsize
    N = Ho * Wo

    # ---- tiling ----
    tn = _choose_n_tile(N, B)
    Np = _round_up(N, tn)
    num_n = Np // tn

    sub_align = 16 if itemsize < 4 else 8          # sublane alignment of feature tile
    P = _round_up(Wf * T, sub_align)               # padded in-plane (w, t) extent

    cap = _vmem_capacity_bytes()                   # 128 MiB v5e/v6e, 64 MiB v7x
    budget = (slab_budget_bytes if slab_budget_bytes is not None
              else max(16 << 20, (cap * 5) // 16))  # ~40 MiB v5e/v6e, ~20 MiB v7x
    hs, num_s, Hf_pad = _choose_h_slab(Hf, P, C, tn, itemsize, budget)
    ts = hs * P

    # ---- operand prep (layout only; zero padding -> exact zero contributions) ----
    feat4 = feature.reshape(B, Hf, Wf * T, C)
    if P != Wf * T or Hf_pad != Hf:
        feat4 = jnp.pad(feat4, ((0, 0), (0, Hf_pad - Hf), (0, P - Wf * T), (0, 0)))
    feat_flat = feat4.astype(compute_dtype).reshape(B, Hf_pad * P, C)

    coords_ln = coords.reshape(B, N, 3).transpose(0, 2, 1)       # (B, 3, N)
    if Np != N:
        coords_ln = jnp.pad(coords_ln, ((0, 0), (0, 0), (0, Np - N)))

    # ---- VMEM accounting / scratch ----
    footprint = (2 * ts * C * itemsize             # double-buffered feature slab
                 + ts * tn * (itemsize + 4)        # wmat (+ f32 outer-product temp)
                 + 2 * C * tn * 4                  # double-buffered output tile
                 + 2 * 8 * tn * 4)                 # double-buffered coords tile
    scratch_shapes = []
    if num_s > 1:
        scratch_shapes = [pltpu.VMEM((C, tn), jnp.float32),      # f32 accumulator
                          pltpu.VMEM((P, tn), jnp.float32)]      # cached in-plane 1-hot
        footprint += (C + P) * tn * 4
    vmem_limit = int(min(cap - (4 << 20), max(32 << 20, footprint + (8 << 20))))

    kernel = functools.partial(
        _grid_sample_identity_kernel,
        Hf=Hf, Wf=Wf, T=T, P=P, hs=hs, num_s=num_s, compute_dtype=compute_dtype)

    out = pl.pallas_call(
        kernel,
        out_shape=jax.ShapeDtypeStruct((B, C, Np), feature.dtype),
        grid_spec=pltpu.PrefetchScalarGridSpec(
            num_scalar_prefetch=0,
            grid=(B, num_n, num_s),
            in_specs=[
                # coords: (3, tn), lane-dense points; resident across s.
                pl.BlockSpec((pl.Squeezed(), 3, tn), lambda b, n, s: (b, 0, n)),
                # feature slab: (ts, C); index_map ignores n, so with num_s == 1
                # (common case) the slab is DMA'd once per batch.
                pl.BlockSpec((pl.Squeezed(), ts, C), lambda b, n, s: (b, s, 0)),
            ],
            # lane-dense output tile (tn >= 128 on lanes -> unmasked stores).
            out_specs=pl.BlockSpec((pl.Squeezed(), C, tn),
                                   lambda b, n, s: (b, 0, n)),
            scratch_shapes=scratch_shapes,
        ),
        compiler_params=pltpu.CompilerParams(
            dimension_semantics=("parallel", "parallel", "arbitrary"),
            vmem_limit_bytes=vmem_limit),
    )(coords_ln, feat_flat)

    if Np != N:
        out = out[:, :, :N]
    # (B, C, N) -> (B, C, Ho, Wo): pure reshape, NO transpose needed.
    return out.reshape(B, C, Ho, Wo)


def _reference(feature, coords):
    """Pure-JAX trilinear grid_sample (align_corners=True, zeros padding)."""
    B, Hf, Wf, T, C = feature.shape
    _, Do, Ho, Wo, _ = coords.shape
    feat = feature.reshape(B, Hf * Wf * T, C)
    c = coords.reshape(B, -1, 3)

    def one(feat_b, c_b):
        x, y, z = c_b[:, 0], c_b[:, 1], c_b[:, 2]
        fx = (x + 1.0) * 0.5 * (T - 1)
        fy = (y + 1.0) * 0.5 * (Wf - 1)
        fz = (z + 1.0) * 0.5 * (Hf - 1)
        x0 = jnp.floor(fx).astype(jnp.int32)
        y0 = jnp.floor(fy).astype(jnp.int32)
        z0 = jnp.floor(fz).astype(jnp.int32)
        wx1, wy1, wz1 = fx - x0, fy - y0, fz - z0
        out = jnp.zeros((c_b.shape[0], C), jnp.float32)
        for dz, wz in ((0, 1.0 - wz1), (1, wz1)):
            for dy, wy in ((0, 1.0 - wy1), (1, wy1)):
                for dx, wx in ((0, 1.0 - wx1), (1, wx1)):
                    ix, iy, iz = x0 + dx, y0 + dy, z0 + dz
                    valid = ((ix >= 0) & (ix < T) & (iy >= 0) & (iy < Wf) &
                             (iz >= 0) & (iz < Hf)).astype(jnp.float32)
                    idx = (jnp.clip(iz, 0, Hf - 1) * (Wf * T)
                           + jnp.clip(iy, 0, Wf - 1) * T
                           + jnp.clip(ix, 0, T - 1))
                    out = out + feat_b[idx] * (wx * wy * wz * valid)[:, None]
        return out

    out = jax.vmap(one)(feat, c)                     # (B, N, C)
    return out.reshape(B, Ho, Wo, C).transpose(0, 3, 1, 2)


if __name__ == "__main__":
    key = jax.random.PRNGKey(0)
    k_feat, k_coord = jax.random.split(key)

    B, Hf, Wf, T, C = 2, 8, 8, 4, 64   # in_channel=64 (module default)
    Ho, Wo = 16, 16                    # upsampled output grid (N = 256 points)

    feature = jax.random.normal(k_feat, (B, Hf, Wf, T, C), dtype=jnp.float32)
    coords = jax.random.uniform(k_coord, (B, 1, Ho, Wo, 3),
                                dtype=jnp.float32, minval=-1.0, maxval=1.0)

    ref = jax.block_until_ready(_reference(feature, coords))

    # Exact path (f32 MXU inputs), single depth slab.
    out_f32 = jax.block_until_ready(
        random_scale_up_sampler(feature, coords, compute_dtype=jnp.float32))
    assert out_f32.shape == (B, C, Ho, Wo), out_f32.shape
    err_f32 = float(jnp.max(jnp.abs(out_f32 - ref)))
    assert err_f32 < 1e-4, f"f32 path max err {err_f32}"

    # Exact path again with a tiny slab budget to exercise the multi-slab
    # (accumulator + cached in-plane one-hot) code path.
    out_multi = jax.block_until_ready(
        random_scale_up_sampler(feature, coords, compute_dtype=jnp.float32,
                                slab_budget_bytes=1))
    err_multi = float(jnp.max(jnp.abs(out_multi - ref)))
    assert err_multi < 1e-4, f"multi-slab path max err {err_multi}"

    # Default fast path: bf16 MXU inputs, f32 accumulation.
    out_bf16 = jax.block_until_ready(random_scale_up_sampler(feature, coords))
    err_bf16 = float(jnp.max(jnp.abs(out_bf16 - ref)))
    assert err_bf16 < 5e-2, f"bf16 path max err {err_bf16}"

    print("KERNEL_OK")
</pallas_src>

<mosaic_0001>
module attributes {stable_mosaic.version = 11 : i64} {
  func.func @_grid_sample_identity_kernel(%arg0: i32, %arg1: i32, %arg2: i32, %arg3: memref<1x3x256xf32, #tpu.memory_space<vmem>>, %arg4: memref<1x256x64xf32, #tpu.memory_space<vmem>>, %arg5: memref<1x64x256xf32, #tpu.memory_space<vmem>>) attributes {dimension_semantics = [#tpu.dimension_semantics<parallel>, #tpu.dimension_semantics<parallel>, #tpu.dimension_semantics<arbitrary>], iteration_bounds = array<i64: 2, 1, 1>, scalar_prefetch = 0 : i64, scratch_operands = 0 : i64, tpu.core_type = #tpu.core_type<tc>, window_params = [{transform_indices = @transform_0, window_bounds = array<i64: 1, 3, 256>}, {transform_indices = @transform_1, window_bounds = array<i64: 1, 256, 64>}, {transform_indices = @transform_2, window_bounds = array<i64: 1, 64, 256>}]} {
    %c0 = arith.constant 0 : index
    %c0_0 = arith.constant 0 : index
    %c0_1 = arith.constant 0 : index
    %0 = vector.load %arg3[%c0, %c0_0, %c0_1] : memref<1x3x256xf32, #tpu.memory_space<vmem>>, vector<1x3x256xf32>
    %1 = vector.shape_cast %0 : vector<1x3x256xf32> to vector<3x256xf32>
    %2 = tpu.iota {dimensions = array<i32: 0>} : vector<3x256xi32>
    %c0_i32 = arith.constant 0 : i32
    %3 = vector.broadcast %c0_i32 : i32 to vector<3x256xi32>
    %4 = arith.cmpi eq, %2, %3 : vector<3x256xi32>
    %c1_i32 = arith.constant 1 : i32
    %5 = vector.broadcast %c1_i32 : i32 to vector<3x256xi32>
    %6 = arith.cmpi eq, %2, %5 : vector<3x256xi32>
    %cst = arith.constant 3.500000e+00 : f32
    %cst_2 = arith.constant 3.500000e+00 : f32
    %7 = vector.broadcast %cst : f32 to vector<3x256xf32>
    %8 = vector.broadcast %cst_2 : f32 to vector<3x256xf32>
    %9 = arith.select %6, %7, %8 : vector<3x256xi1>, vector<3x256xf32>
    %cst_3 = arith.constant 1.500000e+00 : f32
    %10 = vector.broadcast %cst_3 : f32 to vector<3x256xf32>
    %11 = arith.select %4, %10, %9 : vector<3x256xi1>, vector<3x256xf32>
    %cst_4 = arith.constant 1.000000e+00 : f32
    %12 = vector.broadcast %cst_4 : f32 to vector<3x256xf32>
    %13 = arith.addf %1, %12 : vector<3x256xf32>
    %14 = arith.mulf %13, %11 : vector<3x256xf32>
    %15 = math.floor %14 : vector<3x256xf32>
    %16 = arith.subf %14, %15 : vector<3x256xf32>
    %17 = arith.fptosi %15 : vector<3x256xf32> to vector<3x256xi32>
    %18 = vector.extract_strided_slice %17 {offsets = [0, 0], sizes = [1, 256], strides = [1, 1]} : vector<3x256xi32> to vector<1x256xi32>
    %19 = vector.extract_strided_slice %17 {offsets = [1, 0], sizes = [1, 256], strides = [1, 1]} : vector<3x256xi32> to vector<1x256xi32>
    %20 = vector.extract_strided_slice %17 {offsets = [2, 0], sizes = [1, 256], strides = [1, 1]} : vector<3x256xi32> to vector<1x256xi32>
    %21 = vector.extract_strided_slice %16 {offsets = [0, 0], sizes = [1, 256], strides = [1, 1]} : vector<3x256xf32> to vector<1x256xf32>
    %22 = vector.extract_strided_slice %16 {offsets = [1, 0], sizes = [1, 256], strides = [1, 1]} : vector<3x256xf32> to vector<1x256xf32>
    %23 = vector.extract_strided_slice %16 {offsets = [2, 0], sizes = [1, 256], strides = [1, 1]} : vector<3x256xf32> to vector<1x256xf32>
    %24 = tpu.iota {dimensions = array<i32: 0>} : vector<32x256xi32>
    %c3_i32 = arith.constant 3 : i32
    %25 = vector.broadcast %c3_i32 : i32 to vector<32x256xi32>
    %26 = arith.andi %24, %25 : vector<32x256xi32>
    %c2_i32 = arith.constant 2 : i32
    %27 = vector.broadcast %c2_i32 : i32 to vector<32x256xi32>
    %28 = arith.shrsi %24, %27 : vector<32x256xi32>
    %29 = vector.broadcast %19 : vector<1x256xi32> to vector<32x256xi32>
    %30 = arith.cmpi eq, %28, %29 : vector<32x256xi32>
    %cst_5 = arith.constant 1.000000e+00 : f32
    %31 = vector.broadcast %cst_5 : f32 to vector<1x256xf32>
    %32 = arith.subf %31, %22 : vector<1x256xf32>
    %cst_6 = arith.constant 0.000000e+00 : f32
    %33 = vector.shape_cast %32 : vector<1x256xf32> to vector<1x256xf32>
    %34 = vector.broadcast %33 : vector<1x256xf32> to vector<32x256xf32>
    %35 = vector.broadcast %cst_6 : f32 to vector<32x256xf32>
    %36 = arith.select %30, %34, %35 : vector<32x256xi1>, vector<32x256xf32>
    %c1_i32_7 = arith.constant 1 : i32
    %37 = vector.broadcast %c1_i32_7 : i32 to vector<1x256xi32>
    %38 = arith.addi %19, %37 : vector<1x256xi32>
    %39 = vector.broadcast %38 : vector<1x256xi32> to vector<32x256xi32>
    %40 = arith.cmpi eq, %28, %39 : vector<32x256xi32>
    %cst_8 = arith.constant 0.000000e+00 : f32
    %41 = vector.shape_cast %22 : vector<1x256xf32> to vector<1x256xf32>
    %42 = vector.broadcast %41 : vector<1x256xf32> to vector<32x256xf32>
    %43 = vector.broadcast %cst_8 : f32 to vector<32x256xf32>
    %44 = arith.select %40, %42, %43 : vector<32x256xi1>, vector<32x256xf32>
    %45 = arith.addf %36, %44 : vector<32x256xf32>
    %46 = vector.broadcast %18 : vector<1x256xi32> to vector<32x256xi32>
    %47 = arith.cmpi eq, %26, %46 : vector<32x256xi32>
    %cst_9 = arith.constant 1.000000e+00 : f32
    %48 = vector.broadcast %cst_9 : f32 to vector<1x256xf32>
    %49 = arith.subf %48, %21 : vector<1x256xf32>
    %cst_10 = arith.constant 0.000000e+00 : f32
    %50 = vector.shape_cast %49 : vector<1x256xf32> to vector<1x256xf32>
    %51 = vector.broadcast %50 : vector<1x256xf32> to vector<32x256xf32>
    %52 = vector.broadcast %cst_10 : f32 to vector<32x256xf32>
    %53 = arith.select %47, %51, %52 : vector<32x256xi1>, vector<32x256xf32>
    %c1_i32_11 = arith.constant 1 : i32
    %54 = vector.broadcast %c1_i32_11 : i32 to vector<1x256xi32>
    %55 = arith.addi %18, %54 : vector<1x256xi32>
    %56 = vector.broadcast %55 : vector<1x256xi32> to vector<32x256xi32>
    %57 = arith.cmpi eq, %26, %56 : vector<32x256xi32>
    %cst_12 = arith.constant 0.000000e+00 : f32
    %58 = vector.shape_cast %21 : vector<1x256xf32> to vector<1x256xf32>
    %59 = vector.broadcast %58 : vector<1x256xf32> to vector<32x256xf32>
    %60 = vector.broadcast %cst_12 : f32 to vector<32x256xf32>
    %61 = arith.select %57, %59, %60 : vector<32x256xi1>, vector<32x256xf32>
    %62 = arith.addf %53, %61 : vector<32x256xf32>
    %63 = arith.mulf %45, %62 : vector<32x256xf32>
    %64 = tpu.iota {dimensions = array<i32: 0>} : vector<8x256xi32>
    %c0_i32_13 = arith.constant 0 : i32
    %65 = vector.broadcast %c0_i32_13 : i32 to vector<8x256xi32>
    %66 = arith.addi %64, %65 : vector<8x256xi32>
    %67 = vector.broadcast %20 : vector<1x256xi32> to vector<8x256xi32>
    %68 = arith.cmpi eq, %66, %67 : vector<8x256xi32>
    %cst_14 = arith.constant 1.000000e+00 : f32
    %69 = vector.broadcast %cst_14 : f32 to vector<1x256xf32>
    %70 = arith.subf %69, %23 : vector<1x256xf32>
    %cst_15 = arith.constant 0.000000e+00 : f32
    %71 = vector.shape_cast %70 : vector<1x256xf32> to vector<1x256xf32>
    %72 = vector.broadcast %71 : vector<1x256xf32> to vector<8x256xf32>
    %73 = vector.broadcast %cst_15 : f32 to vector<8x256xf32>
    %74 = arith.select %68, %72, %73 : vector<8x256xi1>, vector<8x256xf32>
    %c1_i32_16 = arith.constant 1 : i32
    %75 = vector.broadcast %c1_i32_16 : i32 to vector<1x256xi32>
    %76 = arith.addi %20, %75 : vector<1x256xi32>
    %77 = vector.broadcast %76 : vector<1x256xi32> to vector<8x256xi32>
    %78 = arith.cmpi eq, %66, %77 : vector<8x256xi32>
    %cst_17 = arith.constant 0.000000e+00 : f32
    %79 = vector.shape_cast %23 : vector<1x256xf32> to vector<1x256xf32>
    %80 = vector.broadcast %79 : vector<1x256xf32> to vector<8x256xf32>
    %81 = vector.broadcast %cst_17 : f32 to vector<8x256xf32>
    %82 = arith.select %78, %80, %81 : vector<8x256xi1>, vector<8x256xf32>
    %83 = arith.addf %74, %82 : vector<8x256xf32>
    %84 = vector.shape_cast %83 : vector<8x256xf32> to vector<8x1x256xf32>
    %85 = vector.shape_cast %63 : vector<32x256xf32> to vector<1x32x256xf32>
    %86 = vector.broadcast %84 : vector<8x1x256xf32> to vector<8x32x256xf32>
    %87 = vector.broadcast %85 : vector<1x32x256xf32> to vector<8x32x256xf32>
    %88 = arith.mulf %86, %87 : vector<8x32x256xf32>
    %89 = vector.shape_cast %88 : vector<8x32x256xf32> to vector<256x256xf32>
    %c0_18 = arith.constant 0 : index
    %c0_19 = arith.constant 0 : index
    %c0_20 = arith.constant 0 : index
    %90 = vector.load %arg4[%c0_18, %c0_19, %c0_20] : memref<1x256x64xf32, #tpu.memory_space<vmem>>, vector<1x256x64xf32>
    %91 = vector.shape_cast %90 : vector<1x256x64xf32> to vector<256x64xf32>
    %cst_21 = arith.constant dense<0.000000e+00> : vector<64x256xf32>
    %92 = tpu.matmul %91, %89, %cst_21 {dimension_numbers = #tpu.dot_dimension_numbers<[0], [0], [1], [1], [0, 1, 1, 1], [], []>} : vector<256x64xf32>, vector<256x256xf32>, vector<64x256xf32> -> vector<64x256xf32>
    %c0_22 = arith.constant 0 : index
    %c0_23 = arith.constant 0 : index
    %c0_24 = arith.constant 0 : index
    %93 = vector.load %arg5[%c0_22, %c0_23, %c0_24] : memref<1x64x256xf32, #tpu.memory_space<vmem>>, vector<1x64x256xf32>
    %94 = vector.shape_cast %93 : vector<1x64x256xf32> to vector<64x256xf32>
    %95 = vector.shape_cast %92 : vector<64x256xf32> to vector<1x64x256xf32>
    tpu.vector_store %arg5[%c0_22, %c0_23, %c0_24], %95 {strides = array<i32>} : memref<1x64x256xf32, #tpu.memory_space<vmem>>, vector<1x64x256xf32>,
    return
  }
  func.func @transform_0(%arg0: i32, %arg1: i32, %arg2: i32) -> (i32, i32, i32) {
    %c0_i32 = arith.constant 0 : i32
    %c0_i32_0 = arith.constant 0 : i32
    return %arg0, %c0_i32, %arg1 : i32, i32, i32
  }
  func.func @transform_1(%arg0: i32, %arg1: i32, %arg2: i32) -> (i32, i32, i32) {
    %c0_i32 = arith.constant 0 : i32
    %c0_i32_0 = arith.constant 0 : i32
    return %arg0, %arg2, %c0_i32 : i32, i32, i32
  }
  func.func @transform_2(%arg0: i32, %arg1: i32, %arg2: i32) -> (i32, i32, i32) {
    %c0_i32 = arith.constant 0 : i32
    %c0_i32_0 = arith.constant 0 : i32
    return %arg0, %c0_i32, %arg1 : i32, i32, i32
  }
}

</mosaic_0001>

<bundles_post_ra>
// kernel: tpu_custom_call.1
= control target key start
LH: loop header
LB: loop body
LE: loop exit
PB: predicated region body
PF: predicated region fallthrough
CT: control target
= control target key end

     0   :  { %7 = vsyncpa [#allocation3], 0  ;;  %s2101_s0 = inlined_call_operand.vmem [shape: f32[2,3,256], index: 0, kind: input, shape index: {}]   ;;  %s2102_s1 = inlined_call_operand.vmem [shape: f32[2,256,64], index: 1, kind: input, shape index: {}]   ;;  %s2103_s2 = inlined_call_operand.hbm [shape: f32[2,64,256], index: 2, kind: output, shape index: {}]  }
   0x1   :  { %9 = vsyncpa [#allocation3 + $0x1], 0  ;;  %s1438_s9 = smov 0   ;;  %s1440_s10 = smov 0  }
   0x2   :  { %s1442_s11 = smov 0   ;;  %s1444_s12 = smov 0  }
   0x3   :  { %s1446_s13 = smov 0   ;;  %s1448_s14 = smov 0  }
   0x4 LB: > { %s1089_s15 = sadd.s32 4294967295, %s1415_s14   ;;  %s1090_s16 = sadd.s32 4294967294, %s1415_s14   ;;  %s1415_s14 = sphi %s1448_s14, %s15_s14   ;;  %s1411_s13 = sphi %s1446_s13, %s2116_s13   ;;  %s1407_s12 = sphi %s1444_s12, %s2115_s12   ;;  %s1403_s11 = sphi %s1442_s11, %s2114_s11   ;;  %s1399_s10 = sphi %s1440_s10, %s2113_s10   ;;  %s1395_s9 = sphi %s1438_s9, %s2112_s9  }
   0x5   : > { %s34_s17 = sadd.s32 1, %s1411_s13  ;;  %s99_s18 = sadd.s32 1, %s1403_s11 }
   0x6   : > { %p36_p0 = scmp.ge.s32.totalorder %s34_s17, 2  ;;  %p109_p1 = scmp.ne.s32.totalorder %s1403_s11, %s1399_s10 }
   0x7   : > { %p110_p2 = scmp.eq.s32.totalorder %s1089_s15, 1  ;;  %p115_p3 = scmp.ne.s32.totalorder %s1399_s10, %s1395_s9 }
   0x8   : > { %s2118_s17 = smov (%p36_p0, %s34_s17), 0  ;;  %p116_p5 = scmp.eq.s32.totalorder %s1090_s16, 1 }
   0x9   : > { %p1478_p4 = por %p110_p2, %p109_p1  ;;  %s94_s20 = ssub.s32 %s1411_s13, %s2118_s17 }
   0xa   : > { %p1093_p6 = scmp.ge.s32.totalorder %s1415_s14, 1  ;;  %p97_p7 = scmp.eq.s32.totalorder %s94_s20, 0 }
   0xb   : > { %p1485_p8 = por %p116_p5, %p115_p3  ;;  %p160_p9 = scmp.lt.s32.totalorder %s1415_s14, 3 }
   0xc   : > { %s1491_s22 = scalar_select %p97_p7, %s1403_s11, %s99_s18  }
   0xd   : > { %p161_p10 = pnand %p1093_p6, %p160_p9 }
   0xe   : > { %p196_p11 = scmp.lt.s32.totalorder (!%p161_p10), %s1407_s12, 1  ;;  %v217_v0 = vlaneseq (!%p161_p10)  ;;  %v1417_v1 = vmov (!%p161_p10), 839922192   ;;  %v1418_v14 = vmov (!%p161_p10), 1966171168   ;;  %v1419_v16 = vmov (!%p161_p10), 3.5  }
   0xf   : > { %164 = sbr.rel (%p161_p10) target bundleno = 418 (0x1a2), region = 28  ;;  %v224_v2 = vunpack.c.l.s4 (!%p161_p10), %v1417_v1  ;;  %v557_v15 = vunpack.c.l.s4 (!%p161_p10), %v1418_v14  ;;  %s192_s4 = sand.u32 (!%p161_p10), 1, %s1399_s10  }
  0x10   : > { %v1500_v3 = vshrl.u32 (!%p161_p10), %v217_v0, 7  ;;  %s1094_s5 = sshll.u32 (!%p161_p10), %s192_s4, 7  ;;  %s1106_s7 = sshll.u32 (!%p161_p10), %s1407_s12, 11 }
  0x11   : > { %v225_v9 = vunpack.c.0.s8 (!%p161_p10), %v224_v2  ;;  %v558_v29 = vunpack.c.0.s8 (!%p161_p10), %v557_v15  ;;  %s2026_s6 = scalar_lea.vmem (!%p161_p10), [#allocation2], %s1094_s5  ;;  %s2047_s18 = scalar_lea.hbm (!%p161_p10), %s2103_s2, %s1106_s7 }
  0x12   : > { %vm219_vm0 = vcmp.eq.s32.totalorder (!%p161_p10), %v1500_v3, 0  ;;  %v235_v21 = vadd.s32 (!%p161_p10), 8, %v1500_v3  ;;  %v1525_v27 = vand.u32 (!%p161_p10), 3, %v1500_v3  ;;  %v1528_v28 = vshra.s32 (!%p161_p10), %v1500_v3, 2  ;;  %s989_s8 = sshll.u32 (!%p161_p10), %s2026_s6, 4  ;;  %s2049_s8 = int_to_ptr.vmem [resolvable:$true] %s989_s8 }
  0x13   : > { %v228_v13 = vsub.s32 (!%p161_p10), %v225_v9, %v1500_v3  ;;  %v220_v17 = vsel (!%p161_p10), %vm219_vm0, 1.5, %v1419_v16  ;;  %v1537_v33 = vsub.s32 (!%p161_p10), 1, %v1500_v3  ;;  %v1540_v34 = vsub.s32 (!%p161_p10), 5, %v1500_v3  ;;  %s1337_s20 = scalar_lea.vmem (!%p161_p10), %s2049_s8, 2048 }
  0x14   : > { %v236_v41 = vadd.s32 (!%p161_p10), 16, %v1500_v3  ;;  %v1564_v45 = vand.u32 (!%p161_p10), 3, %v235_v21  ;;  %v1566_v46 = vshra.s32 (!%p161_p10), %v235_v21, 2  ;;  %v237_v47 = vadd.s32 (!%p161_p10), 24, %v1500_v3  ;;  %p1338_p12 = scmp.ne.s32.totalorder (!%p161_p10), %s2049_s8, %s1337_s20 }
  0x15   : > { %v229_v26 = vrot.slane (!%p161_p10), %v220_v17, %v228_v13  ;;  %v1579_v52 = vsub.s32 (!%p161_p10), 0, %v1500_v3  ;;  %v364_v53 = vsub.s32 (!%p161_p10), 4, %v1500_v3  ;;  %v1583_v54 = vsub.s32 (!%p161_p10), %v558_v29, %v1500_v3 }
  0x16   : > { %s197_s23 = scalar_select %p196_p11, %s1407_s12, 1  ;;  %v1597_v60 = vsub.s32 2, %v1500_v3  ;;  %v1600_v61 = vsub.s32 6, %v1500_v3  ;;  %v1623_v9 = vshra.s32 %v237_v47, 2 }
  0x17   : > { %s2055_s12 = scalar_lea.sflag [#allocation3], %s192_s4  ;;  %p1339_p13 = pnand %p1338_p12, %p1478_p4 }
  0x18   : > { %s1105_s24 = sshll.u32 %s197_s23, 8  ;;  %s1104_s28 = sshll.u32 %s197_s23, 3 }
  0x19   : > { %s1498_s27 = scalar_lea.vmem %s2102_s1, %s1105_s24  ;;  %s203_s3 = scalar_lea.vmem %s2101_s0, %s1104_s28 }
  0x1a   : > { %v748_v4 = vld [vmem:[%s1498_s27] sm:$0xff]  ;;  %v749_v6 = vld [vmem:[%s1498_s27 + $0x8] sm:$0xff]  ;;  %v750_v11 = vld [vmem:[%s1498_s27 + $0x10] sm:$0xff]  ;;  %p1340_p0 = pneg %p1339_p13  ;;  %s1420_s23 = smov [#allocation2]  }
  0x1b   : > { %v764_v5 = vld [vmem:[%s1498_s27 + $0x80] sm:$0xff]  ;;  %v765_v8 = vld [vmem:[%s1498_s27 + $0x88] sm:$0xff]  ;;  %v766_v12 = vld [vmem:[%s1498_s27 + $0x90] sm:$0xff]  ;;  %s1341_s24 = sshll.u32 %s1420_s23, 4  ;;  %s1342_s24 = int_to_ptr.vmem [resolvable:$false] %s1341_s24 }
  0x1c   : > { %v1265_v7 = vpack.i.bf16 %v748_v4, %v764_v5  ;;  %v1267_v10 = vpack.i.bf16 %v749_v6, %v765_v8  ;;  %v1269_v18 = vpack.i.bf16 %v750_v11, %v766_v12  ;;  %v751_v19 = vld [vmem:[%s1498_s27 + $0x18] sm:$0xff]  ;;  %v752_v22 = vld [vmem:[%s1498_s27 + $0x20] sm:$0xff]  ;;  %v1519_v24 = vld [vmem:[%s1498_s27 + $0x28] sm:$0xff]  ;;  %v1613_v4 = vand.u32 3, %v236_v41  ;;  %s1343_s25 = scalar_lea.vmem %s1342_s24, 4096  ;;  %p1344_p1 = scmp.lt.s32.totalorder %s2049_s8, %s1342_s24 }
  0x1d   : > { %v767_v20 = vld [vmem:[%s1498_s27 + $0x98] sm:$0xff]  ;;  %v768_v23 = vld [vmem:[%s1498_s27 + $0xa0] sm:$0xff]  ;;  %v1522_v25 = vld [vmem:[%s1498_s27 + $0xa8] sm:$0xff]  ;;  %v1615_v5 = vshra.s32 %v236_v41, 2  ;;  %v1621_v8 = vand.u32 3, %v237_v47  ;;  %p1345_p2 = scmp.lt.s32.totalorder %s1343_s25, %s1337_s20 }
  0x1e   : > { %1266 = vxpose.xlu0.b32.start [1/16] (narrow) %v1265_v7, 64  ;;  %v1531_v30 = vld [vmem:[%s1498_s27 + $0x30] sm:$0xff]  ;;  %v216_v32 = vld [vmem:[%s203_s3] sm:$0x77]  ;;  %v1271_v35 = vpack.i.bf16 %v751_v19, %v767_v20  ;;  %v1543_v36 = vld [vmem:[%s1498_s27 + $0x38] sm:$0xff]  ;;  %v1273_v55 = vpack.i.bf16 %v752_v22, %v768_v23  ;;  %v1275_v56 = vpack.i.bf16 %v1519_v24, %v1522_v25 }
  0x1f   : > { %v1534_v31 = vld [vmem:[%s1498_s27 + $0xb0] sm:$0xff]  ;;  %v1546_v37 = vld [vmem:[%s1498_s27 + $0xb8] sm:$0xff]  ;;  %v1549_v38 = vld [vmem:[%s1498_s27 + $0x40] sm:$0xff]  ;;  %v221_v40 = vadd.f32 1.0, %v216_v32  ;;  %p1346_p3 = por %p1345_p2, %p1344_p1 }
  0x20   : > { %v1552_v39 = vld [vmem:[%s1498_s27 + $0xc0] sm:$0xff]  ;;  %v1556_v42 = vld [vmem:[%s1498_s27 + $0x48] sm:$0xff]  ;;  %v1562_v44 = vld [vmem:[%s1498_s27 + $0x50] sm:$0xff]  ;;  %v1277_v62 = vpack.i.bf16 %v1531_v30, %v1534_v31  ;;  %v1279_v6 = vpack.i.bf16 %v1543_v36, %v1546_v37 }
  0x21   : > { %v1559_v43 = vld [vmem:[%s1498_s27 + $0xc8] sm:$0xff]  ;;  %v1570_v48 = vld [vmem:[%s1498_s27 + $0xd0] sm:$0xff]  ;;  %v1573_v49 = vld [vmem:[%s1498_s27 + $0x58] sm:$0xff]  ;;  %v231_v51 = vmul.f32 %v229_v26, %v221_v40  ;;  %v1281_v7 = vpack.i.bf16 %v1549_v38, %v1552_v39  ;;  %p1347_p5 = pnand %p1346_p3, %p1340_p0 }
  0x22   : > { %1268 = vxpose.xlu0.b32.cont [2/16] (narrow) %v1267_v10, 64  ;;  %v1576_v50 = vld [vmem:[%s1498_s27 + $0xd8] sm:$0xff]  ;;  %v1588_v57 = vld [vmem:[%s1498_s27 + $0x60] sm:$0xff]  ;;  %v1594_v59 = vld [vmem:[%s1498_s27 + $0x68] sm:$0xff]  ;;  %v1283_v10 = vpack.i.bf16 %v1556_v42, %v1559_v43 }
  0x23   : > { %v1591_v58 = vld [vmem:[%s1498_s27 + $0xe0] sm:$0xff]  ;;  %v1605_v63 = vld [vmem:[%s1498_s27 + $0xe8] sm:$0xff]  ;;  %v1608_v0 = vld [vmem:[%s1498_s27 + $0x70] sm:$0xff]  ;;  %v232_v2 = vfloor.f32 %v231_v51 }
  0x24   : > { %v1611_v1 = vld [vmem:[%s1498_s27 + $0xf0] sm:$0xff] }
  0x25   : > { %v1629_v12 = vsub.f32 %v231_v51, %v232_v2  ;;  %v1203_v13 = vtrunc.f32 %v232_v2 }
  0x26   : > { %1270 = vxpose.xlu0.b32.cont [3/16] (narrow) %v1269_v18, 64 }
  0x27   : > { %v1639_v18 = vcvt.f32.s32 %v1203_v13  ;;  %v1642_v19 = vsub.f32 1.0, %v1629_v12  ;;  %v331_v20 = vrot.slane %v1629_v12, %v1540_v34  ;;  %v439_v21 = vrot.slane %v1629_v12, %v364_v53 }
  0x28   : > { %v533_v22 = vrot.slane %v1629_v12, %v1597_v60  ;;  %v537_v23 = vrot.slane %v1629_v12, %v1600_v61  ;;  %v327_v24 = vrot.slane %v1629_v12, %v1537_v33 }
  0x29   : > { %v253_v26 = vrot.slane %v1639_v18, %v1540_v34  ;;  %v279_v29 = vrot.slane %v1642_v19, %v1540_v34  ;;  %v1660_v30 = vadd.s32 1, %v1639_v18  ;;  %v1663_v31 = vrot.slane %v331_v20, %v1537_v33 }
  0x2a   : > { %1272 = vxpose.xlu0.b32.cont [4/16] (narrow) %v1271_v35, 64  ;;  %v365_v32 = vrot.slane %v1639_v18, %v364_v53  ;;  %v389_v35 = vrot.slane %v1642_v19, %v364_v53  ;;  %v1668_v40 = vrot.slane %v439_v21, %v1579_v52  ;;  %v477_v41 = vrot.slane %v1639_v18, %v1597_v60 }
  0x2b   : > { %v1673_v47 = vrot.slane %v253_v26, %v1537_v33  ;;  %v1676_v51 = vrot.slane %v279_v29, %v1537_v33  ;;  %v415_v2 = vrot.slane %v1660_v30, %v364_v53  ;;  %v495_v25 = vrot.slane %v1642_v19, %v1597_v60 }
  0x2c   : > { %v1682_v13 = vrot.slane %v365_v32, %v1579_v52  ;;  %v1685_v20 = vrot.slane %v389_v35, %v1579_v52  ;;  %v485_v21 = vrot.slane %v477_v41, %v1597_v60  ;;  %v543_v36 = vrot.slane %v533_v22, %v1597_v60 }
  0x2d   : > { %vm263_vm1 = vcmp.eq.s32.totalorder %v1528_v28, %v1673_v47  ;;  %vm265_vm2 = vcmp.eq.s32.totalorder %v1566_v46, %v1673_v47  ;;  %v1698_v53 = vrot.slane %v415_v2, %v1579_v52  ;;  %v505_v37 = vrot.slane %v495_v25, %v1597_v60 }
  0x2e   : > { %1274 = vxpose.xlu0.b32.cont [5/16] (narrow) %v1273_v55, 64  ;;  %v306_v55 = vrot.slane %v1660_v30, %v1540_v34  ;;  %v291_v26 = vsel %vm263_vm1, %v1676_v51, 0.0  ;;  %v293_v29 = vsel %vm265_vm2, %v1676_v51, 0.0  ;;  %vm375_vm3 = vcmp.eq.s32.totalorder %v1525_v27, %v1682_v13 }
  0x2f   : > { %vm377_vm4 = vcmp.eq.s32.totalorder %v1564_v45, %v1682_v13  ;;  %v401_v32 = vsel %vm375_vm3, %v1685_v20, 0.0  ;;  %vm425_vm7 = vcmp.eq.s32.totalorder %v1525_v27, %v1698_v53  ;;  %vm427_vm8 = vcmp.eq.s32.totalorder %v1564_v45, %v1698_v53 }
  0x30   : > { %v1695_v34 = vrot.slane %v306_v55, %v1537_v33  ;;  %v403_v35 = vsel %vm377_vm4, %v1685_v20, 0.0  ;;  %v451_v17 = vsel %vm425_vm7, %v1668_v40, 0.0  ;;  %v453_v16 = vsel %vm427_vm8, %v1668_v40, 0.0 }
  0x31   : > { %v459_v15 = vadd.f32 %v451_v17, %v401_v32  ;;  %v461_v14 = vadd.f32 %v453_v16, %v403_v35  ;;  %vm490_vm9 = vcmp.eq.s32.totalorder %v1500_v3, %v485_v21  ;;  %v519_v16 = vrot.slane %v1660_v30, %v1600_v61 }
  0x32   : > { %1276 = vxpose.xlu0.b32.cont [6/16] (narrow) %v1275_v56, 64  ;;  %v481_v56 = vrot.slane %v1639_v18, %v1600_v61  ;;  %vm316_vm5 = vcmp.eq.s32.totalorder %v1528_v28, %v1695_v34  ;;  %vm318_vm6 = vcmp.eq.s32.totalorder %v1566_v46, %v1695_v34  ;;  %v385_v21 = vrot.slane %v1642_v19, %v1579_v52 }
  0x33   : > { %v343_v41 = vsel %vm316_vm5, %v1663_v31, 0.0  ;;  %v345_v55 = vsel %vm318_vm6, %v1663_v31, 0.0  ;;  %v527_v35 = vrot.slane %v519_v16, %v1597_v60  ;;  %vm267_vm3 = vcmp.eq.s32.totalorder %v1615_v5, %v1673_v47 }
  0x34   : > { %v353_v2 = vadd.f32 %v345_v55, %v293_v29  ;;  %v489_v11 = vrot.slane %v481_v56, %v1597_v60  ;;  %v515_v29 = vrot.slane %v1660_v30, %v1597_v60  ;;  %v1800_v42 = vrot.slane %v385_v21, %v1579_v52 }
  0x35   : > { %vm529_vm12 = vcmp.eq.s32.totalorder %v1500_v3, %v527_v35  ;;  %vm269_vm4 = vcmp.eq.s32.totalorder %v1623_v9, %v1673_v47  ;;  %vm320_vm5 = vcmp.eq.s32.totalorder %v1615_v5, %v1695_v34  ;;  %vm322_vm8 = vcmp.eq.s32.totalorder %v1623_v9, %v1695_v34 }
  0x36   : > { %1278 = vxpose.xlu0.b32.cont [7/16] (narrow) %v1277_v62, 64  ;;  %v351_v62 = vadd.f32 %v343_v41, %v291_v26  ;;  %v499_v26 = vrot.slane %v1642_v19, %v1600_v61  ;;  %v1735_v56 = vmul.f32 %v461_v14, %v353_v2  ;;  %vm491_vm10 = vcmp.eq.s32.totalorder %v1500_v3, %v489_v11 }
  0x37   : > { %v523_v32 = vrot.slane %v515_v29, %v1597_v60  ;;  %v547_v41 = vrot.slane %v537_v23, %v1597_v60  ;;  %v249_v61 = vrot.slane %v1639_v18, %v1537_v33  ;;  %v275_v14 = vrot.slane %v1642_v19, %v1537_v33 }
  0x38   : > { %v1733_v17 = vmul.f32 %v459_v15, %v351_v62  ;;  %v302_v11 = vrot.slane %v1660_v30, %v1537_v33  ;;  %v510_v15 = vsel %vm490_vm9, %v505_v37, 0.0  ;;  %v2107_v37 = vpack.i.bf16 %v1562_v44, %v1570_v48 }
  0x39   : > { %vm528_vm11 = vcmp.eq.s32.totalorder %v1500_v3, %v523_v32  ;;  %v549_v23 = vsel %vm529_vm12, %v547_v41, 0.0  ;;  %v1758_v25 = vrot.slane %v249_v61, %v1537_v33  ;;  %v1761_v55 = vrot.slane %v275_v14, %v1537_v33 }
  0x3a   : > { %1280 = vxpose.xlu0.b32.cont [8/16] (narrow) %v1279_v6, 64  ;;  %v509_v6 = vrot.slane %v499_v26, %v1597_v60  ;;  %v548_v60 = vsel %vm528_vm11, %v543_v36, 0.0  ;;  %v1768_v39 = vrot.slane %v302_v11, %v1537_v33  ;;  %v1774_v3 = vrot.slane %v327_v24, %v1537_v33 }
  0x3b   : > { %v1763_v62 = vadd.f32 %v548_v60, %v510_v15  ;;  %vm262_vm13 = vcmp.eq.s32.totalorder %v1528_v28, %v1758_v25  ;;  %vm264_vm14 = vcmp.eq.s32.totalorder %v1566_v46, %v1758_v25  ;;  %v297_v61 = vsel %vm269_vm4, %v1676_v51, 0.0 }
  0x3c   : > { %v511_v22 = vsel %vm491_vm10, %v509_v6, 0.0  ;;  %v290_v2 = vsel %vm262_vm13, %v1761_v55, 0.0  ;;  %v292_v26 = vsel %vm264_vm14, %v1761_v55, 0.0  ;;  %vm315_vm15 = vcmp.eq.s32.totalorder %v1528_v28, %v1768_v39 }
  0x3d   : > { %v1765_v38 = vadd.f32 %v549_v23, %v511_v22  ;;  %vm317_vm0 = vcmp.eq.s32.totalorder %v1566_v46, %v1768_v39  ;;  %v411_v28 = vrot.slane %v1660_v30, %v1579_v52  ;;  %v2106_v46 = vrot.slane %v1629_v12, %v1579_v52 }
  0x3e   : > { %1282 = vxpose.xlu0.b32.cont [9/16] (narrow) %v1281_v7, 64  ;;  %v361_v7 = vrot.slane %v1639_v18, %v1579_v52  ;;  %v342_v18 = vsel %vm315_vm15, %v1774_v3, 0.0  ;;  %v295_v12 = vsel %vm267_vm3, %v1676_v51, 0.0  ;;  %v347_v47 = vsel %vm320_vm5, %v1663_v31, 0.0 }
  0x3f   : > { %v554_v24 = vcombine.low %v1763_v62, %v1765_v38  ;;  %v350_v29 = vadd.f32 %v342_v18, %v290_v2  ;;  %v1816_v36 = vrot.slane %v2106_v46, %v1579_v52  ;;  %v1830_v41 = vrot.slane %v411_v28, %v1579_v52  ;;  %v763_v46 = vld [vmem:[%s1498_s27 + $0x78] sm:$0xff] }
  0x40   : > { %v1797_v19 = vrot.slane %v361_v7, %v1579_v52  ;;  %v2108_v14 = vpack.i.bf16 %v1573_v49, %v1576_v50  ;;  %v355_v23 = vadd.f32 %v347_v47, %v295_v12  ;;  %vm379_vm9 = vcmp.eq.s32.totalorder %v1613_v4, %v1682_v13 }
  0x41   : > { %v1803_v43 = vrot.slane %v554_v24, %v1583_v54  ;;  %vm424_vm6 = vcmp.eq.s32.totalorder %v1525_v27, %v1830_v41  ;;  %vm426_vm7 = vcmp.eq.s32.totalorder %v1564_v45, %v1830_v41  ;;  %vm381_vm10 = vcmp.eq.s32.totalorder %v1621_v8, %v1682_v13 }
  0x42   : > { %1284 = vxpose.xlu0.b32.cont [10/16] (narrow) %v1283_v10, 64  ;;  %v344_v10 = vsel %vm317_vm0, %v1774_v3, 0.0  ;;  %vm374_vm1 = vcmp.eq.s32.totalorder %v1525_v27, %v1797_v19  ;;  %vm376_vm2 = vcmp.eq.s32.totalorder %v1564_v45, %v1797_v19  ;;  %v450_v51 = vsel %vm424_vm6, %v1816_v36, 0.0 }
  0x43   : > { %v352_v16 = vadd.f32 %v344_v10, %v292_v26  ;;  %v570_v30 = vcombine.high %v1803_v43, %v1803_v43  ;;  %v1825_v6 = vrot.slane %v1803_v43, %v1583_v54  ;;  %v400_v32 = vsel %vm374_vm1, %v1800_v42, 0.0 }
  0x44   : > { %v402_v35 = vsel %vm376_vm2, %v1800_v42, 0.0  ;;  %v452_v27 = vsel %vm426_vm7, %v1816_v36, 0.0  ;;  %v458_v22 = vadd.f32 %v450_v51, %v400_v32  ;;  %v349_v45 = vsel %vm322_vm8, %v1663_v31, 0.0 }
  0x45   : > { %v611_v44 = vrot.slane %v1825_v6, %v1537_v33  ;;  %v1842_v48 = vrot.slane %v1825_v6, %v1579_v52  ;;  %v460_v60 = vadd.f32 %v452_v27, %v402_v35  ;;  %v357_v7 = vadd.f32 %v349_v45, %v297_v61 }
  0x46   : > { %1286 = vxpose.xlu0.b32.cont [11/16] (narrow) %v2107_v37, 64  ;;  %v1865_v49 = vmul.f32 %v458_v22, %v350_v29  ;;  %v405_v21 = vsel %vm379_vm9, %v1685_v20, 0.0  ;;  %v407_v24 = vsel %vm381_vm10, %v1685_v20, 0.0  ;;  %v2109_v31 = vpack.i.bf16 %v1588_v57, %v1591_v58 }
  0x47   : > { %v685_v11 = vmul.f32 %v611_v44, %v1733_v17  ;;  %v687_v15 = vmul.f32 %v611_v44, %v1735_v56  ;;  %v1867_v50 = vmul.f32 %v460_v60, %v352_v16  ;;  %vm429_vm11 = vcmp.eq.s32.totalorder %v1613_v4, %v1698_v53 }
  0x48   : > { %vm431_vm12 = vcmp.eq.s32.totalorder %v1621_v8, %v1698_v53  ;;  %vm266_vm13 = vcmp.eq.s32.totalorder %v1615_v5, %v1758_v25  ;;  %v684_v13 = vmul.f32 %v1842_v48, %v1865_v49  ;;  %v455_v2 = vsel %vm429_vm11, %v1668_v40, 0.0 }
  0x49   : > { %v1107_v34 = vpack.c.bf16 %v687_v15, %v685_v11  ;;  %v686_v20 = vmul.f32 %v1842_v48, %v1867_v50  ;;  %v457_v57 = vsel %vm431_vm12, %v1668_v40, 0.0  ;;  %v463_v58 = vadd.f32 %v455_v2, %v405_v21 }
  0x4a   : > { %1288 = vxpose.xlu0.b32.cont [12/16] (narrow) %v2108_v14, 64  ;;  %v465_v26 = vadd.f32 %v457_v57, %v407_v24  ;;  %vm268_vm14 = vcmp.eq.s32.totalorder %v1623_v9, %v1758_v25  ;;  %v294_v53 = vsel %vm266_vm13, %v1761_v55, 0.0  ;;  %vm319_vm15 = vcmp.eq.s32.totalorder %v1615_v5, %v1768_v39 }
  0x4b   : > { %1108 = vmatprep.subr.bf16.mxu0 %v1107_v34  ;;  %1171 = vmatprep.subr.bf16.mxu1 %v1107_v34  ;;  %v1109_v18 = vpack.c.bf16 %v686_v20, %v684_v13  ;;  %v296_v10 = vsel %vm268_vm14, %v1761_v55, 0.0  ;;  %vm321_vm0 = vcmp.eq.s32.totalorder %v1623_v9, %v1768_v39  ;;  %v2110_v40 = vpack.i.bf16 %v1594_v59, %v1605_v63  ;;  %v779_v55 = vld [vmem:[%s1498_s27 + $0xf8] sm:$0xff] }
  0x4c   : > { %v1897_v29 = vmul.f32 %v463_v58, %v355_v23  ;;  %v1899_v28 = vmul.f32 %v465_v26, %v357_v7  ;;  %v346_v25 = vsel %vm319_vm15, %v1774_v3, 0.0  ;;  %v348_v16 = vsel %vm321_vm0, %v1774_v3, 0.0 }
  0x4d   : > { %1110 = vmatpush1.bf16.msra.mxu0 %v1109_v18  ;;  %v354_v37 = vadd.f32 %v346_v25, %v294_v53  ;;  %vm378_vm1 = vcmp.eq.s32.totalorder %v1613_v4, %v1797_v19  ;;  %vm380_vm2 = vcmp.eq.s32.totalorder %v1621_v8, %v1797_v19  ;;  %1187 = vmatpush1.bf16.msra.mxu1 %v1109_v18 }
  0x4e   : > { %1290 = vxpose.xlu0.b32.cont [13/16] (narrow) %v2109_v31, 64  ;;  %v689_v59 = vmul.f32 %v611_v44, %v1897_v29  ;;  %v691_v63 = vmul.f32 %v611_v44, %v1899_v28  ;;  %v404_v5 = vsel %vm378_vm1, %v1800_v42, 0.0  ;;  %v406_v9 = vsel %vm380_vm2, %v1800_v42, 0.0 }
  0x4f   : > { %v356_v39 = vadd.f32 %v348_v16, %v296_v10  ;;  %vm428_vm3 = vcmp.eq.s32.totalorder %v1613_v4, %v1830_v41  ;;  %vm430_vm4 = vcmp.eq.s32.totalorder %v1621_v8, %v1830_v41  ;;  %v592_v3 = vrot.slane %v570_v30, %v1583_v54 }
  0x50   : > { %v2111_v19 = vpack.i.bf16 %v1608_v0, %v1611_v1  ;;  %v1295_v32 = vpack.i.bf16 %v763_v46, %v779_v55  ;;  %v1111_v35 = vpack.c.bf16 %v691_v63, %v689_v59  ;;  %v454_v42 = vsel %vm428_vm3, %v1816_v36, 0.0 }
  0x51   : > { %v456_v44 = vsel %vm430_vm4, %v1816_v36, 0.0  ;;  %v462_v12 = vadd.f32 %v454_v42, %v404_v5  ;;  %v619_v61 = vrot.slane %v592_v3, %v1537_v33  ;;  %v615_v8 = vrot.slane %v592_v3, %v1579_v52 }
  0x52   : > { %1292 = vxpose.xlu0.b32.cont [14/16] (narrow) %v2110_v40, 64  ;;  %v464_v4 = vadd.f32 %v456_v44, %v406_v9  ;;  %1112 = vmatprep.subr.bf16.mxu0 %v1111_v35  ;;  %v600_v43 = vcombine.high %v1825_v6, %v1825_v6  ;;  %v602_v45 = vcombine.high %v592_v3, %v592_v3 }
  0x53   : > { %1172 = vmatprep.subr.bf16.mxu1 %v1111_v35  ;;  %v1930_v30 = vmul.f32 %v462_v12, %v354_v37  ;;  %v693_v1 = vmul.f32 %v619_v61, %v1733_v17  ;;  %v695_v41 = vmul.f32 %v619_v61, %v1735_v56  ;;  %v692_v14 = vmul.f32 %v615_v8, %v1865_v49 }
  0x54   : > { %v1932_v0 = vmul.f32 %v464_v4, %v356_v39  ;;  %v694_v6 = vmul.f32 %v615_v8, %v1867_v50  ;;  %v697_v15 = vmul.f32 %v619_v61, %v1897_v29  ;;  %v699_v51 = vmul.f32 %v619_v61, %v1899_v28 }
  0x55   : > { %v688_v36 = vmul.f32 %v1842_v48, %v1930_v30  ;;  %v1115_v11 = vpack.c.bf16 %v695_v41, %v693_v1  ;;  %v627_v27 = vrot.slane %v600_v43, %v1537_v33  ;;  %v623_v60 = vrot.slane %v600_v43, %v1579_v52 }
  0x56   : > { %1294 = vxpose.xlu0.b32.cont [15/16] (narrow) %v2111_v19, 64  ;;  %v690_v47 = vmul.f32 %v1842_v48, %v1932_v0  ;;  %v555_v23 = vcombine.high %v1763_v62, %v1765_v38  ;;  %v1117_v48 = vpack.c.bf16 %v694_v6, %v692_v14  ;;  %v696_v34 = vmul.f32 %v615_v8, %v1930_v30 }
  0x57   : > { %v698_v7 = vmul.f32 %v615_v8, %v1932_v0  ;;  %v1119_v21 = vpack.c.bf16 %v699_v51, %v697_v15  ;;  %v701_v24 = vmul.f32 %v627_v27, %v1733_v17  ;;  %v703_v31 = vmul.f32 %v627_v27, %v1735_v56 }
  0x58   : > { %v1113_v22 = vpack.c.bf16 %v690_v47, %v688_v36  ;;  %v700_v13 = vmul.f32 %v623_v60, %v1865_v49  ;;  %v702_v20 = vmul.f32 %v623_v60, %v1867_v50  ;;  %v705_v38 = vmul.f32 %v627_v27, %v1897_v29 }
  0x59   : > { %v1121_v62 = vpack.c.bf16 %v698_v7, %v696_v34  ;;  %v707_v2 = vmul.f32 %v627_v27, %v1899_v28  ;;  %v1123_v57 = vpack.c.bf16 %v703_v31, %v701_v24  ;;  %v635_v58 = vrot.slane %v602_v45, %v1537_v33 }
  0x5a   : > { %1296 = vxpose.xlu0.b32.end [16/16] (narrow) %v1295_v32, 64  ;;  %1114 = vmatpush1.bf16.msra.mxu0 %v1113_v22  ;;  %v569_v26 = vrot.slane %v555_v23, %v1583_v54  ;;  %v704_v53 = vmul.f32 %v623_v60, %v1930_v30  ;;  %v706_v18 = vmul.f32 %v623_v60, %v1932_v0 }
  0x5b   : > { %1188 = vmatpush1.bf16.msra.mxu1 %v1113_v22  ;;  %1116 = vmatprep.subr.bf16.mxu0 %v1115_v11  ;;  %v631_v10 = vrot.slane %v602_v45, %v1579_v52  ;;  %v1125_v40 = vpack.c.bf16 %v702_v20, %v700_v13  ;;  %v1127_v25 = vpack.c.bf16 %v707_v2, %v705_v38 }
  0x5c   : > { %1173 = vmatprep.subr.bf16.mxu1 %v1115_v11  ;;  %v709_v16 = vmul.f32 %v635_v58, %v1733_v17  ;;  %v711_v46 = vmul.f32 %v635_v58, %v1735_v56  ;;  %v585_v55 = vrot.slane %v569_v26, %v1583_v54  ;;  %v1129_v37 = vpack.c.bf16 %v706_v18, %v704_v53 }
  0x5d   : > { %v708_v59 = vmul.f32 %v631_v10, %v1865_v49  ;;  %v710_v63 = vmul.f32 %v631_v10, %v1867_v50  ;;  %v713_v5 = vmul.f32 %v635_v58, %v1897_v29  ;;  %v715_v9 = vmul.f32 %v635_v58, %v1899_v28 }
  0x5e   : > { %1118 = vmatpush1.bf16.msra.mxu0 %v1117_v48  ;;  %v1131_v39 = vpack.c.bf16 %v711_v46, %v709_v16  ;;  %v643_v3 = vrot.slane %v585_v55, %v1537_v33  ;;  %v571_v19 = vcombine.high %v569_v26, %v569_v26  ;;  %v712_v32 = vmul.f32 %v631_v10, %v1930_v30 }
  0x5f   : > { %1189 = vmatpush1.bf16.msra.mxu1 %v1117_v48  ;;  %1120 = vmatprep.subr.bf16.mxu0 %v1119_v21  ;;  %v639_v35 = vrot.slane %v585_v55, %v1579_v52  ;;  %v1133_v42 = vpack.c.bf16 %v710_v63, %v708_v59  ;;  %v1135_v44 = vpack.c.bf16 %v715_v9, %v713_v5 }
  0x60   : > { %1174 = vmatprep.subr.bf16.mxu1 %v1119_v21  ;;  %v714_v12 = vmul.f32 %v631_v10, %v1932_v0  ;;  %v717_v4 = vmul.f32 %v643_v3, %v1733_v17  ;;  %v719_v61 = vmul.f32 %v643_v3, %v1735_v56  ;;  %v599_v8 = vrot.slane %v571_v19, %v1583_v54 }
  0x61   : > { %v716_v43 = vmul.f32 %v639_v35, %v1865_v49  ;;  %v718_v1 = vmul.f32 %v639_v35, %v1867_v50  ;;  %v721_v41 = vmul.f32 %v643_v3, %v1897_v29  ;;  %v723_v36 = vmul.f32 %v643_v3, %v1899_v28 }
  0x62   : > { %1122 = vmatpush1.bf16.msra.mxu0 %v1121_v62  ;;  %v1137_v47 = vpack.c.bf16 %v714_v12, %v712_v32  ;;  %v603_v14 = vcombine.high %v599_v8, %v599_v8  ;;  %v1139_v6 = vpack.c.bf16 %v719_v61, %v717_v4  ;;  %v651_v11 = vrot.slane %v599_v8, %v1537_v33 }
  0x63   : > { %1190 = vmatpush1.bf16.msra.mxu1 %v1121_v62  ;;  %1124 = vmatprep.subr.bf16.mxu0 %v1123_v57  ;;  %v720_v15 = vmul.f32 %v639_v35, %v1930_v30  ;;  %v601_v54 = vcombine.high %v585_v55, %v585_v55  ;;  %v1141_v22 = vpack.c.bf16 %v718_v1, %v716_v43 }
  0x64   : > { %1175 = vmatprep.subr.bf16.mxu1 %v1123_v57  ;;  %v1982_v51 = vrot.slane %v603_v14, %v1537_v33  ;;  %v1985_v27 = vrot.slane %v603_v14, %v1579_v52  ;;  %v1143_v60 = vpack.c.bf16 %v723_v36, %v721_v41  ;;  %v722_v45 = vmul.f32 %v639_v35, %v1932_v0 }
  0x65   : > { %v647_v23 = vrot.slane %v599_v8, %v1579_v52  ;;  %v725_v21 = vmul.f32 %v651_v11, %v1733_v17  ;;  %v727_v24 = vmul.f32 %v651_v11, %v1735_v56  ;;  %v729_v57 = vmul.f32 %v651_v11, %v1897_v29 }
  0x66   : > { %1126 = vmatpush1.bf16.msra.mxu0 %v1125_v40  ;;  %v741_v48 = vmul.f32 %v1982_v51, %v1733_v17  ;;  %v743_v34 = vmul.f32 %v1982_v51, %v1735_v56  ;;  %v740_v7 = vmul.f32 %v1985_v27, %v1865_v49  ;;  %v742_v31 = vmul.f32 %v1985_v27, %v1867_v50 }
  0x67   : > { %1191 = vmatpush1.bf16.msra.mxu1 %v1125_v40  ;;  %1128 = vmatprep.subr.bf16.mxu0 %v1127_v25  ;;  %v1145_v20 = vpack.c.bf16 %v722_v45, %v720_v15  ;;  %v724_v38 = vmul.f32 %v647_v23, %v1865_v49  ;;  %v726_v2 = vmul.f32 %v647_v23, %v1867_v50 }
  0x68   : > { %1176 = vmatprep.subr.bf16.mxu1 %v1127_v25  ;;  %v1163_v13 = vpack.c.bf16 %v743_v34, %v741_v48  ;;  %v1165_v62 = vpack.c.bf16 %v742_v31, %v740_v7  ;;  %v1147_v58 = vpack.c.bf16 %v727_v24, %v725_v21  ;;  %v731_v26 = vmul.f32 %v651_v11, %v1899_v28 }
  0x69   : > { %v659_v53 = vrot.slane %v601_v54, %v1537_v33  ;;  %v728_v18 = vmul.f32 %v647_v23, %v1930_v30  ;;  %v1149_v10 = vpack.c.bf16 %v726_v2, %v724_v38  ;;  %v730_v40 = vmul.f32 %v647_v23, %v1932_v0 }
  0x6a   : > { %1130 = vmatpush1.bf16.msra.mxu0 %v1129_v37  ;;  %v655_v25 = vrot.slane %v601_v54, %v1579_v52  ;;  %v1151_v16 = vpack.c.bf16 %v731_v26, %v729_v57  ;;  %v747_v3 = vmul.f32 %v1982_v51, %v1899_v28  ;;  %v744_v19 = vmul.f32 %v1985_v27, %v1930_v30 }
  0x6b   : > { %1192 = vmatpush1.bf16.msra.mxu1 %v1129_v37  ;;  %1132 = vmatprep.subr.bf16.mxu0 %v1131_v39  ;;  %v733_v46 = vmul.f32 %v659_v53, %v1733_v17  ;;  %v735_v55 = vmul.f32 %v659_v53, %v1735_v56  ;;  %v1153_v37 = vpack.c.bf16 %v730_v40, %v728_v18 }
  0x6c   : > { %1177 = vmatprep.subr.bf16.mxu1 %v1131_v39  ;;  %v732_v33 = vmul.f32 %v655_v25, %v1865_v49  ;;  %v734_v59 = vmul.f32 %v655_v25, %v1867_v50  ;;  %v737_v5 = vmul.f32 %v659_v53, %v1897_v29  ;;  %v739_v52 = vmul.f32 %v659_v53, %v1899_v28 }
  0x6d   : > { %v1155_v63 = vpack.c.bf16 %v735_v55, %v733_v46  ;;  %v736_v17 = vmul.f32 %v655_v25, %v1930_v30  ;;  %v738_v56 = vmul.f32 %v655_v25, %v1932_v0  ;;  %v745_v50 = vmul.f32 %v1982_v51, %v1897_v29 }
  0x6e   : > { %1134 = vmatpush1.bf16.msra.mxu0 %v1133_v42  ;;  %v1157_v9 = vpack.c.bf16 %v734_v59, %v732_v33  ;;  %v1159_v39 = vpack.c.bf16 %v739_v52, %v737_v5  ;;  %v746_v32 = vmul.f32 %v1985_v27, %v1932_v0 }
  0x6f   : > { %1193 = vmatpush1.bf16.msra.mxu1 %v1133_v42  ;;  %1136 = vmatprep.subr.bf16.mxu0 %v1135_v44  ;;  %v1161_v49 = vpack.c.bf16 %v738_v56, %v736_v17  ;;  %v1167_v35 = vpack.c.bf16 %v747_v3, %v745_v50 }
  0x70   : > { %1178 = vmatprep.subr.bf16.mxu1 %v1135_v44  ;;  %v1169_v42 = vpack.c.bf16 %v746_v32, %v744_v19 }
  0x72   : > { %1138 = vmatpush1.bf16.msra.mxu0 %v1137_v47 }
  0x73   : > { %1194 = vmatpush1.bf16.msra.mxu1 %v1137_v47  ;;  %1140 = vmatprep.subr.bf16.mxu0 %v1139_v6 }
  0x74   : > { %1179 = vmatprep.subr.bf16.mxu1 %v1139_v6 }
  0x76   : > { %1142 = vmatpush1.bf16.msra.mxu0 %v1141_v22 }
  0x77   : > { %1195 = vmatpush1.bf16.msra.mxu1 %v1141_v22  ;;  %1144 = vmatprep.subr.bf16.mxu0 %v1143_v60 }
  0x78   : > { %1180 = vmatprep.subr.bf16.mxu1 %v1143_v60 }
  0x7a   : > { %1146 = vmatpush1.bf16.msra.mxu0 %v1145_v20 }
  0x7b   : > { %1196 = vmatpush1.bf16.msra.mxu1 %v1145_v20  ;;  %1148 = vmatprep.subr.bf16.mxu0 %v1147_v58 }
  0x7c   : > { %1181 = vmatprep.subr.bf16.mxu1 %v1147_v58 }
  0x7e   : > { %1150 = vmatpush1.bf16.msra.mxu0 %v1149_v10 }
  0x7f   : > { %1197 = vmatpush1.bf16.msra.mxu1 %v1149_v10  ;;  %1152 = vmatprep.subr.bf16.mxu0 %v1151_v16 }
  0x80   : > { %1182 = vmatprep.subr.bf16.mxu1 %v1151_v16 }
  0x82   : > { %1154 = vmatpush1.bf16.msra.mxu0 %v1153_v37 }
  0x83   : > { %1198 = vmatpush1.bf16.msra.mxu1 %v1153_v37  ;;  %1156 = vmatprep.subr.bf16.mxu0 %v1155_v63 }
  0x84   : > { %1183 = vmatprep.subr.bf16.mxu1 %v1155_v63 }
  0x86   : > { %1158 = vmatpush1.bf16.msra.mxu0 %v1157_v9 }
  0x87   : > { %1199 = vmatpush1.bf16.msra.mxu1 %v1157_v9  ;;  %1160 = vmatprep.subr.bf16.mxu0 %v1159_v39 }
  0x88   : > { %1184 = vmatprep.subr.bf16.mxu1 %v1159_v39 }
  0x8a   : > { %1162 = vmatpush1.bf16.msra.mxu0 %v1161_v49 }
  0x8b   : > { %1200 = vmatpush1.bf16.msra.mxu1 %v1161_v49  ;;  %1164 = vmatprep.subr.bf16.mxu0 %v1163_v13 }
  0x8c   : > { %1185 = vmatprep.subr.bf16.mxu1 %v1163_v13 }
  0x8e   : > { %1166 = vmatpush1.bf16.msra.mxu0 %v1165_v62 }
  0x8f   : > { %1201 = vmatpush1.bf16.msra.mxu1 %v1165_v62  ;;  %1168 = vmatprep.subr.bf16.mxu0 %v1167_v35 }
  0x90   : > { %1186 = vmatprep.subr.bf16.mxu1 %v1167_v35 }
  0x92   : > { %1170 = vmatpush1.bf16.msra.mxu0 %v1169_v42 }
  0x93   : > { %1202 = vmatpush1.bf16.msra.mxu1 %v1169_v42 }
  0x9e   : > { %v1297_v29 = vpop.trf.xlu0 }
  0x9f   : > { %v1298_v28 = vunpack.i.l.bf16 %v1297_v29  ;;  %v1301_v44 = vunpack.i.h.bf16 %v1297_v29 }
  0xa1   : > { %908 = vmatprep.mubr.f32.mxu0 %v1298_v28 }
  0xa2   : > { %v1302_v12 = vpop.trf.xlu0  ;;  %909 = vmatmul.mubr.f32.vlgmr.msra.gmra.mrb[0].mxu0 %v1301_v44 }
  0xa3   : > { %v1303_v30 = vunpack.i.l.bf16 %v1302_v12  ;;  %v1306_v4 = vunpack.i.h.bf16 %v1302_v12 }
  0xa5   : > { %914 = vmatprep.mubr.f32.mxu0 %v1303_v30 }
  0xa6   : > { %v1307_v0 = vpop.trf.xlu0  ;;  %915 = vmatmul.mubr.f32.gmra.mrb[2].mxu0 %v1306_v4 }
  0xa7   : > { %v1308_v61 = vunpack.i.l.bf16 %v1307_v0  ;;  %v1311_v8 = vunpack.i.h.bf16 %v1307_v0 }
  0xa9   : > { %920 = vmatprep.mubr.f32.mxu0 %v1308_v61 }
  0xaa   : > { %v1312_v43 = vpop.trf.xlu0  ;;  %921 = vmatmul.mubr.f32.gmra.mrb[4].mxu0 %v1311_v8 }
  0xab   : > { %v1313_v1 = vunpack.i.l.bf16 %v1312_v43  ;;  %v1316_v41 = vunpack.i.h.bf16 %v1312_v43 }
  0xad   : > { %926 = vmatprep.mubr.f32.mxu0 %v1313_v1 }
  0xae   : > { %v1317_v36 = vpop.trf.xlu0  ;;  %927 = vmatmul.mubr.f32.gmra.mrb[6].mxu0 %v1316_v41 }
  0xaf   : > { %v1318_v47 = vunpack.i.l.bf16 %v1317_v36  ;;  %v1321_v14 = vunpack.i.h.bf16 %v1317_v36 }
  0xb1   : > { %932 = vmatprep.mubr.f32.mxu1 %v1318_v47 }
  0xb2   : > { %v1322_v6 = vpop.trf.xlu0  ;;  %933 = vmatmul.mubr.f32.vlgmr.msra.gmra.mrb[0].mxu1 %v1321_v14 }
  0xb3   : > { %v1323_v11 = vunpack.i.l.bf16 %v1322_v6  ;;  %v1326_v15 = vunpack.i.h.bf16 %v1322_v6 }
  0xb5   : > { %938 = vmatprep.mubr.f32.mxu1 %v1323_v11 }
  0xb6   : > { %v1327_v54 = vpop.trf.xlu0  ;;  %939 = vmatmul.mubr.f32.gmra.mrb[2].mxu1 %v1326_v15 }
  0xb7   : > { %v1328_v51 = vunpack.i.l.bf16 %v1327_v54  ;;  %v1331_v27 = vunpack.i.h.bf16 %v1327_v54 }
  0xb9   : > { %944 = vmatprep.mubr.f32.mxu1 %v1328_v51 }
  0xba   : > { %v1332_v22 = vpop.trf.xlu0  ;;  %945 = vmatmul.mubr.f32.gmra.mrb[4].mxu1 %v1331_v27 }
  0xbb   : > { %v1336_v60 = vunpack.i.h.bf16 %v1332_v22  ;;  %v1333_v45 = vunpack.i.l.bf16 %v1332_v22 }
  0xbd   : > { %950 = vmatprep.mubr.f32.mxu1 %v1333_v45 }
  0xbe   : > { %951 = vmatmul.mubr.f32.gmra.mrb[6].mxu1 %v1336_v60 }
 0x175   : > { %v910_v23 = vpop.f32.mrb[0].mxu0 }
 0x176   : > { %957 = vst [vmem:[%s2026_s6] sm:$0xff] %v910_v23  ;;  %v912_v48 = vpop.f32.mrb[1].mxu0 }
 0x177   : > { %958 = vst [vmem:[%s2026_s6 + $0x8] sm:$0xff] %v912_v48 }
 0x179   : > { %v916_v34 = vpop.f32.mrb[2].mxu0 }
 0x17a   : > { %959 = vst [vmem:[%s2026_s6 + $0x10] sm:$0xff] %v916_v34  ;;  %v918_v7 = vpop.f32.mrb[3].mxu0 }
 0x17b   : > { %960 = vst [vmem:[%s2026_s6 + $0x18] sm:$0xff] %v918_v7 }
 0x17d   : > { %v922_v21 = vpop.f32.mrb[4].mxu0 }
 0x17e   : > { %961 = vst [vmem:[%s2026_s6 + $0x20] sm:$0xff] %v922_v21  ;;  %v924_v24 = vpop.f32.mrb[5].mxu0 }
 0x17f   : > { %962 = vst [vmem:[%s2026_s6 + $0x28] sm:$0xff] %v924_v24 }
 0x181   : > { %v928_v31 = vpop.f32.mrb[6].mxu0 }
 0x182   : > { %963 = vst [vmem:[%s2026_s6 + $0x30] sm:$0xff] %v928_v31  ;;  %v930_v13 = vpop.f32.mrb[7].mxu0 }
 0x183   : > { %964 = vst [vmem:[%s2026_s6 + $0x38] sm:$0xff] %v930_v13 }
 0x185   : > { %v934_v20 = vpop.f32.mrb[0].mxu1 }
 0x186   : > { %965 = vst [vmem:[%s2026_s6 + $0x40] sm:$0xff] %v934_v20  ;;  %v936_v62 = vpop.f32.mrb[1].mxu1 }
 0x187   : > { %966 = vst [vmem:[%s2026_s6 + $0x48] sm:$0xff] %v936_v62 }
 0x189   : > { %v940_v38 = vpop.f32.mrb[2].mxu1 }
 0x18a   : > { %967 = vst [vmem:[%s2026_s6 + $0x50] sm:$0xff] %v940_v38  ;;  %v942_v2 = vpop.f32.mrb[3].mxu1 }
 0x18b   : > { %968 = vst [vmem:[%s2026_s6 + $0x58] sm:$0xff] %v942_v2 }
 0x18d   : > { %v946_v57 = vpop.f32.mrb[4].mxu1 }
 0x18e   : > { %969 = vst [vmem:[%s2026_s6 + $0x60] sm:$0xff] %v946_v57  ;;  %v948_v58 = vpop.f32.mrb[5].mxu1 }
 0x18f   : > { %970 = vst [vmem:[%s2026_s6 + $0x68] sm:$0xff] %v948_v58 }
 0x191   : > { %v952_v26 = vpop.f32.mrb[6].mxu1 }
 0x192   : > { %971 = vst [vmem:[%s2026_s6 + $0x70] sm:$0xff] %v952_v26  ;;  %v954_v53 = vpop.f32.mrb[7].mxu1 }
 0x193   : > { %972 = vst [vmem:[%s2026_s6 + $0x78] sm:$0xff] %v954_v53 }
 0x194   : > { %1350 = shalt.err (!%p1347_p5)
}
 0x195   : > { %s1351_s26 = scalar_lea.hbm %s2047_s18, 2048  ;;  %s1355_s29 = scalar_lea.hbm %s2103_s2, 4096 }
 0x196   : > { %p1352_p6 = scmp.ne.s32.totalorder %s2047_s18, %s1351_s26  ;;  %p1356_p10 = scmp.lt.u32.totalorder %s2047_s18, %s2103_s2 }
 0x197   : > { %p1357_p11 = scmp.lt.u32.totalorder %s1355_s29, %s1351_s26  ;;  %p1359_p13 = scmp.lt.u32.totalorder %s1351_s26, %s2047_s18 }
 0x198   : > { %p1353_p7 = pnand %p1352_p6, %p1478_p4 }
 0x199   : > { %p1358_p12 = por %p1357_p11, %p1356_p10 }
 0x19a   : > { %p1354_p9 = pneg %p1353_p7 }
 0x19b   : > { %p1360_p0 = por %p1359_p13, %p1358_p12 }
 0x19d   : > { %p1361_p1 = pnand %p1360_p0, %p1354_p9 }
 0x19f   : > { %1364 = shalt.err (!%p1361_p1)
}
 0x1a0   : > { %s1421_s4 = smov 256   ;;  %s1422_s5 = smov 16  }
 0x1a1   : > { %1205 = dma.vmem_to_hbm [thread:$0]  (%p1478_p4), %s2049_s8, 2048, %s2047_s18, %s2055_s12, %s1421_s4, %s1421_s4, %s1422_s5  }
 0x1a2 PF: > { %p1211_p2 = scmp.ge.s32.totalorder %s1415_s14, 2  ;;  %s1004_s6 = sand.u32 1, %s1395_s9  }
 0x1a3   : > { %s1005_s7 = scalar_lea.sflag [#allocation3], %s1004_s6 }
 0x1a4   : > { %p1208_p3 = pnand %p1211_p2, %p1485_p8 }
 0x1a6   : > { %1390 = dma.done.wait (!%p1208_p3), %s1005_s7, 2048  }
 0x1a7   : > { %1392 = vsyncadd (!%p1208_p3), %s1005_s7, 4294965248  ;;  %s15_s14 = sadd.s32 1, %s1415_s14   ;;  %s2112_s9 = smov %s1399_s10 }
 0x1a8   : > { %p12_p5 = scmp.ge.s32.totalorder %s15_s14, 4   ;;  %s2113_s10 = smov %s1403_s11 }
 0x1a9   : > { %s2114_s11 = smov %s1491_s22  ;;  %s2115_s12 = smov %s1411_s13 }
 0x1aa   : > { %s2116_s13 = smov %s2118_s17  ;;  %14 = sbr.rel (!%p12_p5) target bundleno = 4 (0x4), region = 66 }
 0x1b1   :  { %1010 = vsyncpa [#allocation3], 1 }
 0x1b2   :  { %1012 = vsyncpa [#allocation3 + $0x1], 1 }

</bundles_post_ra>
